<compile_context>
chip_gen: v7x
topology: tpu7x:2x2x1
jax: 0.10.0
libtpu: 0.0.40
codegen_flags: <defaults>
</compile_context>

<pallas_src>
import math

import jax
import jax.numpy as jnp
from jax.experimental import pallas as pl
from jax.experimental.pallas import tpu as pltpu

_LANE = 128


def _cdiv(a, b):
    return (a + b - 1) // b


def _round_up(a, b):
    return _cdiv(a, b) * b


def _sublane(dtype):
    # sublane pack: 8 rows for 4-byte, 16 for 2-byte, 32 for 1-byte dtypes
    return max(8, 32 // jnp.dtype(dtype).itemsize)


def _tpu_info():
    """(vmem_capacity_bytes, assumed #TensorCores); conservative default."""
    capacity = 64 * 1024 * 1024  # conservative (v7x-sized per-core VMEM)
    try:
        capacity = int(pltpu.get_tpu_info().vmem_capacity_bytes)
    except Exception:
        pass
    # 64 MiB per-core VMEM -> v7x-class part with 2 TensorCores per chip.
    n_tc = 2 if capacity <= 64 * 1024 * 1024 else 1
    return capacity, n_tc


# ---------------- kernels ----------------


def _make_rows_kernel(exact_div):
    """Single-pass: each block holds full rows; softmax over the last axis."""

    def kernel(x_ref, o_ref):
        x = x_ref[...].astype(jnp.float32)
        m = jnp.max(x, axis=-1, keepdims=True)
        e = jnp.exp(x - m)
        s = jnp.sum(e, axis=-1, keepdims=True)
        if exact_div:
            o_ref[...] = (e / s).astype(o_ref.dtype)
        else:
            o_ref[...] = (e * pl.reciprocal(s, approx=True)).astype(o_ref.dtype)

    return kernel


def _make_stats_kernel(n_cols, tc, needs_mask):
    """Pass 1 (column-tiled): online per-row (max, sum-exp).

    Outputs are VMEM-resident accumulators across the 'arbitrary' column axis
    (out_specs return block (i, 0) for every c), so no scratch is needed.
    """

    def kernel(x_ref, m_ref, l_ref):
        c = pl.program_id(1)

        @pl.when(c == 0)
        def _init():
            m_ref[...] = jnp.full(m_ref.shape, -jnp.inf, m_ref.dtype)
            l_ref[...] = jnp.zeros(l_ref.shape, l_ref.dtype)

        x = x_ref[...].astype(jnp.float32)
        if needs_mask:
            # Mask trailing lanes of the (partial) last column tile so the
            # unspecified out-of-bounds data never reaches the row reduction.
            col = jax.lax.broadcasted_iota(jnp.int32, x.shape, 1) + c * tc
            x = jnp.where(col < n_cols, x, -jnp.inf)

        m_prev = m_ref[...]
        m_new = jnp.maximum(m_prev, jnp.max(x, axis=-1, keepdims=True))
        alpha = jnp.exp(m_prev - m_new)
        l_ref[...] = l_ref[...] * alpha + jnp.sum(
            jnp.exp(x - m_new), axis=-1, keepdims=True)
        m_ref[...] = m_new

    return kernel


def _make_apply_kernel(exact_div):
    """Pass 2 (column-tiled): exp(x - m) normalized by l.

    No trailing-lane mask needed: out-of-bounds stores are dropped by Pallas.
    """

    def kernel(x_ref, m_ref, l_ref, o_ref):
        x = x_ref[...].astype(jnp.float32)
        e = jnp.exp(x - m_ref[...])
        if exact_div:
            o_ref[...] = (e / l_ref[...]).astype(o_ref.dtype)
        else:
            o_ref[...] = (e * pl.reciprocal(l_ref[...], approx=True)).astype(
                o_ref.dtype)

    return kernel


# ---------------- wrapper ----------------


def softmax_nd(x, spatial_dims=2, block_budget_bytes=None):
    """Softmax over the last `spatial_dims` dims of x (NCHW / NCDHW)."""
    assert spatial_dims in (2, 3), "spatial_dims must be 2 or 3"
    orig_shape = x.shape
    assert len(orig_shape) >= spatial_dims
    dtype = x.dtype
    assert jnp.issubdtype(dtype, jnp.floating), "SoftmaxND expects a float dtype"

    lead = orig_shape[: len(orig_shape) - spatial_dims]
    n_rows = int(math.prod(lead)) if lead else 1
    n_cols = int(math.prod(orig_shape[len(orig_shape) - spatial_dims:]))

    itemsize = jnp.dtype(dtype).itemsize
    sublane = _sublane(dtype)
    exact_div = itemsize >= 4  # exact divide for f32+, approx recip for bf16/f16

    capacity, n_tc = _tpu_info()
    vmem_limit = int(capacity * 3 // 4)
    if block_budget_bytes is None:
        # A few-MiB block already hits the HBM roofline; keep VMEM headroom
        # for the f32 intermediates (esp. on v7x's 64 MiB VMEM).
        block_budget_bytes = min(16 * 1024 * 1024, capacity // 8)
    # >= ~4 blocks per TensorCore keeps each core's DMA pipeline full.
    min_steps = 8 if n_tc >= 2 else 4

    x2d = x.reshape(n_rows, n_cols)
    n_cols_lane = _round_up(n_cols, _LANE)  # VMEM-footprint accounting only
    total_bytes = n_rows * n_cols * itemsize

    # Per row of a block: double-buffered in+out tiles (2*2*itemsize) plus
    # ~16 B/elem of f32 temporaries (x_f32, x-m broadcast, e, e*inv).
    bytes_per_row = n_cols_lane * (4 * itemsize + 16)
    rows_in_budget = block_budget_bytes // bytes_per_row
    single_pass = rows_in_budget >= min(sublane, n_rows)

    tr = None
    if single_pass:
        if n_rows <= sublane:
            tr = n_rows  # full row extent (exempt from the sublane rule)
        else:
            tr_max = (n_rows // sublane) * sublane
            tr = min(max(sublane, (rows_in_budget // sublane) * sublane), tr_max)
            if tr_max >= min_steps * sublane:
                # Keep >= min_steps grid steps when the row count allows.
                tr = min(tr, max(sublane, _round_up(_cdiv(n_rows, min_steps),
                                                    sublane)))
        steps = _cdiv(n_rows, tr)
        # Few-row / wide-column corner: a 1-2 step grid cannot overlap DMA with
        # compute (and idles the 2nd TensorCore on v7x); column-tile instead.
        if steps < 3 and total_bytes > (4 << 20):
            single_pass = False

    if single_pass:
        tc = n_cols  # full-extent last dim: exempt from 128 rule, no padding
        cost = pl.CostEstimate(
            flops=5 * n_rows * n_cols,
            transcendentals=n_rows * n_cols,
            bytes_accessed=2 * n_rows * n_cols * itemsize)
        out2d = pl.pallas_call(
            _make_rows_kernel(exact_div),
            out_shape=jax.ShapeDtypeStruct((n_rows, n_cols), dtype),
            grid_spec=pltpu.PrefetchScalarGridSpec(
                num_scalar_prefetch=0,
                grid=(_cdiv(n_rows, tr),),
                in_specs=[pl.BlockSpec((tr, tc), lambda i: (i, 0))],
                out_specs=pl.BlockSpec((tr, tc), lambda i: (i, 0)),
            ),
            compiler_params=pltpu.CompilerParams(
                dimension_semantics=("parallel",),
                vmem_limit_bytes=vmem_limit),
            cost_estimate=cost,
        )(x2d)
        return out2d.reshape(orig_shape)

    # -------- two-pass column-tiled path (huge columns / few rows) --------
    if n_rows <= sublane:
        tr = n_rows
    else:
        tr = max(sublane, min((n_rows // sublane) * sublane, 8 * sublane))
    bytes_per_col = tr * (4 * itemsize + 16)
    tc_cap = (block_budget_bytes // max(1, bytes_per_col)) // _LANE * _LANE
    tc_cap = max(_LANE, min(tc_cap, n_cols_lane))
    # Pick the number of column steps first, then equalize tc (multiple of 128)
    # so the last tile's overhang stays < 128 lanes instead of up to tc-128.
    c_steps = _cdiv(n_cols_lane, tc_cap)
    tc = _round_up(_cdiv(n_cols_lane, c_steps), _LANE)
    needs_mask = (n_cols % tc) != 0

    grid = (_cdiv(n_rows, tr), _cdiv(n_cols, tc))

    stats_cost = pl.CostEstimate(
        flops=4 * n_rows * n_cols,
        transcendentals=n_rows * n_cols,
        bytes_accessed=n_rows * n_cols * itemsize + 8 * n_rows)
    m, l = pl.pallas_call(
        _make_stats_kernel(n_cols, tc, needs_mask),
        out_shape=(jax.ShapeDtypeStruct((n_rows, 1), jnp.float32),
                   jax.ShapeDtypeStruct((n_rows, 1), jnp.float32)),
        grid_spec=pltpu.PrefetchScalarGridSpec(
            num_scalar_prefetch=0,
            grid=grid,
            in_specs=[pl.BlockSpec((tr, tc), lambda i, c: (i, c))],
            # Same block index for every c -> VMEM-resident accumulators
            # across the "arbitrary" column axis.
            out_specs=[pl.BlockSpec((tr, 1), lambda i, c: (i, 0)),
                       pl.BlockSpec((tr, 1), lambda i, c: (i, 0))],
        ),
        compiler_params=pltpu.CompilerParams(
            dimension_semantics=("parallel", "arbitrary"),
            vmem_limit_bytes=vmem_limit),
        cost_estimate=stats_cost,
    )(x2d)

    apply_cost = pl.CostEstimate(
        flops=3 * n_rows * n_cols,
        transcendentals=n_rows * n_cols,
        bytes_accessed=2 * n_rows * n_cols * itemsize)
    out2d = pl.pallas_call(
        _make_apply_kernel(exact_div),
        out_shape=jax.ShapeDtypeStruct((n_rows, n_cols), dtype),
        grid_spec=pltpu.PrefetchScalarGridSpec(
            num_scalar_prefetch=0,
            grid=grid,
            in_specs=[pl.BlockSpec((tr, tc), lambda i, c: (i, c)),
                      pl.BlockSpec((tr, 1), lambda i, c: (i, 0)),
                      pl.BlockSpec((tr, 1), lambda i, c: (i, 0))],
            out_specs=pl.BlockSpec((tr, tc), lambda i, c: (i, c)),
        ),
        compiler_params=pltpu.CompilerParams(
            dimension_semantics=("parallel", "parallel"),
            vmem_limit_bytes=vmem_limit),
        cost_estimate=apply_cost,
    )(x2d, m, l)

    return out2d.reshape(orig_shape)


if __name__ == "__main__":
    key = jax.random.PRNGKey(0)
    k1, k2, k3, k4, k5 = jax.random.split(key, 5)

    # spatial_dims=2: NCHW input, softmax over (H, W)
    x = jax.random.normal(k1, (2, 4, 16, 16), dtype=jnp.float32)
    out = jax.block_until_ready(softmax_nd(x, spatial_dims=2))
    ref = jax.nn.softmax(x.reshape(2, 4, -1), axis=-1).reshape(x.shape)
    assert jnp.allclose(out, ref, atol=1e-6, rtol=1e-5)
    assert jnp.allclose(jnp.sum(out, axis=(-2, -1)), 1.0, atol=1e-5)

    # spatial_dims=3: NCDHW input, softmax over (D, H, W)
    x3 = jax.random.normal(k2, (2, 3, 4, 8, 8), dtype=jnp.float32)
    out3 = jax.block_until_ready(softmax_nd(x3, spatial_dims=3))
    ref3 = jax.nn.softmax(x3.reshape(2, 3, -1), axis=-1).reshape(x3.shape)
    assert jnp.allclose(out3, ref3, atol=1e-6, rtol=1e-5)

    # Non-128-multiple spatial extent: no wrapper pad/slice, full-extent block
    x14 = jax.random.normal(k3, (2, 4, 14, 14), dtype=jnp.float32)
    out14 = jax.block_until_ready(softmax_nd(x14, spatial_dims=2))
    ref14 = jax.nn.softmax(x14.reshape(2, 4, -1), axis=-1).reshape(x14.shape)
    assert jnp.allclose(out14, ref14, atol=1e-6, rtol=1e-5)

    # Multi-step row grid (exercises tiled single-pass path)
    xm = jax.random.normal(k4, (4, 16, 24, 24), dtype=jnp.float32)
    outm = jax.block_until_ready(softmax_nd(xm, spatial_dims=2))
    refm = jax.nn.softmax(xm.reshape(64, -1), axis=-1).reshape(xm.shape)
    assert jnp.allclose(outm, refm, atol=1e-6, rtol=1e-5)

    # bf16 input (approx-reciprocal normalization path)
    xb = jax.random.normal(k5, (2, 4, 16, 16), dtype=jnp.bfloat16)
    outb = jax.block_until_ready(softmax_nd(xb, spatial_dims=2))
    refb = jax.nn.softmax(xb.astype(jnp.float32).reshape(2, 4, -1),
                          axis=-1).reshape(xb.shape)
    assert jnp.allclose(outb.astype(jnp.float32), refb, atol=2e-3, rtol=2e-2)

    # Force the two-pass column-tiled (online-softmax) path with a tiny block
    # budget; 14x14 also exercises the in-kernel trailing-lane mask.
    out_tp = jax.block_until_ready(
        softmax_nd(x14, spatial_dims=2, block_budget_bytes=4096))
    assert jnp.allclose(out_tp, ref14, atol=1e-6, rtol=1e-5)

    print("KERNEL_OK")
</pallas_src>

<mosaic_0001>
module attributes {stable_mosaic.version = 11 : i64} {
  func.func @kernel(%arg0: i32, %arg1: memref<8x256xf32, #tpu.memory_space<vmem>>, %arg2: memref<8x256xf32, #tpu.memory_space<vmem>>) attributes {dimension_semantics = [#tpu.dimension_semantics<parallel>], iteration_bounds = array<i64: 1>, scalar_prefetch = 0 : i64, scratch_operands = 0 : i64, tpu.core_type = #tpu.core_type<tc>, window_params = [{transform_indices = @transform_0, window_bounds = array<i64: 8, 256>}, {transform_indices = @transform_1, window_bounds = array<i64: 8, 256>}]} {
    %c0 = arith.constant 0 : index
    %c0_0 = arith.constant 0 : index
    %0 = vector.load %arg1[%c0, %c0_0] : memref<8x256xf32, #tpu.memory_space<vmem>>, vector<8x256xf32>
    %cst = arith.constant dense<0xFF800000> : vector<8xf32>
    %1 = vector.multi_reduction <maximumf>, %0, %cst [1] : vector<8x256xf32> to vector<8xf32>
    %2 = vector.shape_cast %1 : vector<8xf32> to vector<8x1xf32>
    %3 = vector.broadcast %2 : vector<8x1xf32> to vector<8x256xf32>
    %4 = arith.subf %0, %3 : vector<8x256xf32>
    %5 = math.exp %4 : vector<8x256xf32>
    %cst_1 = arith.constant dense<0.000000e+00> : vector<8xf32>
    %6 = vector.multi_reduction <add>, %5, %cst_1 [1] : vector<8x256xf32> to vector<8xf32>
    %7 = vector.shape_cast %6 : vector<8xf32> to vector<8x1xf32>
    %8 = vector.broadcast %7 : vector<8x1xf32> to vector<8x256xf32>
    %9 = arith.divf %5, %8 : vector<8x256xf32>
    %c0_2 = arith.constant 0 : index
    %c0_3 = arith.constant 0 : index
    %10 = vector.load %arg2[%c0_2, %c0_3] : memref<8x256xf32, #tpu.memory_space<vmem>>, vector<8x256xf32>
    tpu.vector_store %arg2[%c0_2, %c0_3], %9 {strides = array<i32>} : memref<8x256xf32, #tpu.memory_space<vmem>>, vector<8x256xf32>,
    return
  }
  func.func @transform_0(%arg0: i32) -> (i32, i32) {
    %c0_i32 = arith.constant 0 : i32
    %c0_i32_0 = arith.constant 0 : i32
    return %arg0, %c0_i32 : i32, i32
  }
  func.func @transform_1(%arg0: i32) -> (i32, i32) {
    %c0_i32 = arith.constant 0 : i32
    %c0_i32_0 = arith.constant 0 : i32
    return %arg0, %c0_i32 : i32, i32
  }
}

</mosaic_0001>

<bundles_post_ra>
// kernel: tpu_custom_call.1
= control target key start
LH: loop header
LB: loop body
LE: loop exit
PB: predicated region body
PF: predicated region fallthrough
CT: control target
= control target key end

     0   :  { %6 = vsyncpa [#allocation3], 0  ;;  %s147_s0 = inlined_call_operand.hbm [shape: f32[8,256], index: 0, kind: input, shape index: {}]   ;;  %s148_s1 = inlined_call_operand.hbm [shape: f32[8,256], index: 1, kind: output, shape index: {}]  }
   0x1   :  { %7 = vsyncpa [#allocation4], 0  ;;  %s111_s6 = smov [#allocation2]   ;;  %s63_s10 = scalar_lea.hbm %s147_s0, 256 }
   0x2   :  { %s14_s7 = sshll.u32 %s111_s6, 4  ;;  %p64_p0 = scmp.ne.s32.totalorder %s147_s0, %s63_s10  ;;  %s15_s7 = int_to_ptr.vmem [resolvable:$true] %s14_s7 }
   0x3   :  { %p67_p1 = scmp.lt.u32.totalorder %s63_s10, %s147_s0 }
   0x5   :  { %p69_p2 = pnand %p67_p1, %p64_p0 }
   0x7   :  { %72 = shalt.err (!%p69_p2)
}
   0x8   :  { %s73_s15 = scalar_lea.vmem %s15_s7, 256  ;;  %p78_p4 = scmp.lt.s32.totalorder %s15_s7, %s15_s7 }
   0x9   :  { %p74_p3 = scmp.ne.s32.totalorder %s15_s7, %s73_s15  ;;  %p79_p5 = scmp.lt.s32.totalorder %s73_s15, %s73_s15 }
   0xb   :  { %p80_p6 = por %p79_p5, %p78_p4 }
   0xd   :  { %p81_p7 = pnand %p80_p6, %p74_p3 }
   0xf   :  { %84 = shalt.err (!%p81_p7)
}
  0x10   :  { %17 = dma.hbm_to_vmem [thread:$0]  %s147_s0, 256, %s15_s7, [#allocation3]  }
  0x11   :  { %107 = dma.done.wait [#allocation3], 256  }
  0x12   :  { %108 = vsyncadd [#allocation3], 4294967040  ;;  %v21_v0 = vld [vmem:[#allocation2] sm:$0xff]  ;;  %v22_v1 = vld [vmem:[#allocation2 + $0x8] sm:$0xff]  ;;  %s112_s0 = smov [#allocation5]  }
  0x13   :  { %v23_v2 = vmax.f32 %v21_v0, %v22_v1  ;;  %s46_s18 = sshll.u32 %s112_s0, 4  ;;  %s47_s18 = int_to_ptr.vmem [resolvable:$true] %s46_s18 }
  0x14   :  { %s85_s19 = scalar_lea.vmem %s47_s18, 256  ;;  %p90_p9 = scmp.lt.s32.totalorder %s47_s18, %s47_s18 }
  0x15   :  { %24 = vmax.xlane.f32.xlu0 %v23_v2  ;;  %p86_p8 = scmp.ne.s32.totalorder %s47_s18, %s85_s19  ;;  %p91_p10 = scmp.lt.s32.totalorder %s85_s19, %s85_s19 }
  0x17   :  { %p92_p11 = por %p91_p10, %p90_p9 }
  0x19   :  { %p93_p12 = pnand %p92_p11, %p86_p8 }
  0xa2   :  { %v25_v3 = vpop.xlane.xlu0 %24 }
  0xa3   :  { %v26_v4 = vsub.f32 %v21_v0, %v25_v3  ;;  %v27_v5 = vsub.f32 %v22_v1, %v25_v3 }
  0xa5   :  { %v28_v6 = vmul.f32 1.442695, %v26_v4  ;;  %v30_v7 = vmul.f32 1.442695, %v27_v5 }
  0xa7   :  { %57 = vpow2.f32 %v28_v6 }
  0xa8   :  { %59 = vpow2.f32 %v30_v7 }
  0xb1   :  { %v58_v8 = vpop.eup %57 }
  0xb2   :  { %v60_v9 = vpop.eup %59 }
  0xb3   :  { %v32_v10 = vadd.f32 %v60_v9, %v58_v8 }
  0xb5   :  { %33 = vadd.xlane.f32.xlu0 %v32_v10 }
 0x142   :  { %v34_v11 = vpop.xlane.xlu0 %33 }
 0x143   :  { %61 = vrcp.f32 %v34_v11 }
 0x14d   :  { %v62_v12 = vpop.eup %61 }
 0x14e   :  { %v36_v13 = vmul.f32 %v62_v12, %v58_v8  ;;  %v37_v14 = vmul.f32 %v62_v12, %v60_v9 }
 0x150   :  { %38 = vst [vmem:[#allocation5] sm:$0xff] %v36_v13  ;;  %39 = vst [vmem:[#allocation5 + $0x8] sm:$0xff] %v37_v14 }
 0x151   :  { %96 = shalt.err (!%p93_p12)
}
 0x152   :  { %s97_s22 = scalar_lea.hbm %s148_s1, 256 }
 0x153   :  { %p98_p13 = scmp.ne.s32.totalorder %s148_s1, %s97_s22  ;;  %p101_p0 = scmp.lt.u32.totalorder %s97_s22, %s148_s1 }
 0x155   :  { %p103_p1 = pnand %p101_p0, %p98_p13 }
 0x157   :  { %106 = shalt.err (!%p103_p1)
}
 0x158   :  { %49 = dma.vmem_to_hbm [thread:$0]  %s47_s18, 256, %s148_s1, [#allocation4]  }
 0x159   :  { %109 = dma.done.wait [#allocation4], 256  }
 0x15a   :  { %110 = vsyncadd [#allocation4], 4294967040 }
 0x15b   :  { %53 = vsyncpa [#allocation3], 1 }
 0x15c   :  { %54 = vsyncpa [#allocation4], 1 }

</bundles_post_ra>
